<compile_context>
chip_gen: v7x
topology: tpu7x:2x2x1
jax: 0.10.0
libtpu: 0.0.40
codegen_flags: <defaults>
</compile_context>

<pallas_src>
import functools

import jax
import jax.numpy as jnp
from jax.experimental import pallas as pl
from jax.experimental.pallas import tpu as pltpu


# ----------------------------- kernel bodies ------------------------------ #
# Each kernel sees one spectrogram block of shape (1, n_mels, T) in VMEM.

def _mvn_kernel(mel_ref, raw_ref, out_ref):
    # Global mean / population std of raw (single fused pass), then affine.
    raw = raw_ref[...].astype(jnp.float32)
    n = raw.shape[-2] * raw.shape[-1]
    inv_n = 1.0 / float(n)                      # Python constant -> VPU mul
    s = jnp.sum(raw)
    ss = jnp.sum(raw * raw)
    mean = s * inv_n
    var = jnp.maximum(ss * inv_n - mean * mean, 0.0)   # clamp cancellation
    std = jnp.sqrt(var)                         # scalar sqrt only
    out_ref[...] = (mel_ref[...].astype(jnp.float32) * std
                    + mean).astype(out_ref.dtype)


def _strip_mvn_kernel(mel_ref, raw_ref, out_ref):
    # Per-mel-bin (time axis) mean / population std, fused sum + sumsq pass.
    raw = raw_ref[...].astype(jnp.float32)
    t = raw.shape[-1]
    inv_t = 1.0 / float(t)
    s = jnp.sum(raw, axis=-1, keepdims=True)            # (1, n_mels, 1)
    ss = jnp.sum(raw * raw, axis=-1, keepdims=True)     # (1, n_mels, 1)
    mean = s * inv_t
    var = jnp.maximum(ss * inv_t - mean * mean, 0.0)
    std = jnp.sqrt(var)                                  # (1, n_mels, 1) sqrt
    out_ref[...] = (mel_ref[...].astype(jnp.float32) * std
                    + mean).astype(out_ref.dtype)


def _minmax_kernel(mel_ref, raw_ref, out_ref):
    raw = raw_ref[...].astype(jnp.float32)
    min_val = jnp.min(raw)
    max_val = jnp.max(raw)
    out_ref[...] = (mel_ref[...].astype(jnp.float32) * (max_val - min_val)
                    + min_val).astype(out_ref.dtype)


# ------------------------------ wrappers ----------------------------------- #

def _call_batched(kernel, mel_spec, non_normed_mel_spec):
    """Run `kernel` per spectrogram over a (B, n_mels, T) batch (one launch)."""
    assert mel_spec.shape == non_normed_mel_spec.shape
    squeeze = mel_spec.ndim == 2
    if squeeze:                                  # single 2-D spectrogram
        mel_spec = mel_spec[None]
        non_normed_mel_spec = non_normed_mel_spec[None]
    assert mel_spec.ndim == 3, "expected (n_mels, T) or (B, n_mels, T)"
    B, n_mels, T = mel_spec.shape

    spec = pl.BlockSpec((1, n_mels, T), lambda b: (b, 0, 0))
    out = pl.pallas_call(
        kernel,
        out_shape=jax.ShapeDtypeStruct((B, n_mels, T), mel_spec.dtype),
        grid=(B,),
        in_specs=[spec, spec],
        out_specs=spec,
        compiler_params=pltpu.CompilerParams(
            dimension_semantics=("parallel",)),   # shards batch across TCs (v7x)
    )(mel_spec, non_normed_mel_spec)
    return out[0] if squeeze else out


def norm_mvn(mel_spec, non_normed_mel_spec):
    return _call_batched(_mvn_kernel, mel_spec, non_normed_mel_spec)


def norm_strip_mvn(mel_spec, non_normed_mel_spec):
    return _call_batched(_strip_mvn_kernel, mel_spec, non_normed_mel_spec)


def norm_minmax(mel_spec, non_normed_mel_spec):
    return _call_batched(_minmax_kernel, mel_spec, non_normed_mel_spec)


def no_norm(mel_spec, non_normed_mel_spec=None):
    # Identity: no kernel launch, no HBM round trip.
    return mel_spec


class DeNormalizer:
    """JAX/Pallas port of the PyTorch DeNormalizer: wraps `fun` and applies it."""

    def __init__(self, fun):
        self.fun = fun

    def __call__(self, mel_spec):
        return self.fun(mel_spec)

    # mirror the PyTorch staticmethod interface
    norm_mvn = staticmethod(norm_mvn)
    norm_strip_mvn = staticmethod(norm_strip_mvn)
    norm_minmax = staticmethod(norm_minmax)
    no_norm = staticmethod(no_norm)


# ------------------------------ references --------------------------------- #

def _ref_mvn(mel, raw):
    mean = jnp.mean(raw)
    std = jnp.sqrt(jnp.mean((raw - mean) ** 2))           # unbiased=False
    return mel * std + mean


def _ref_strip_mvn(mel, raw):
    mean = jnp.mean(raw, axis=-1, keepdims=True)
    std = jnp.sqrt(jnp.mean((raw - mean) ** 2, axis=-1, keepdims=True))
    return mel * std + mean


def _ref_minmax(mel, raw):
    return mel * (jnp.max(raw) - jnp.min(raw)) + jnp.min(raw)


# -------------------------------- main ------------------------------------- #

if __name__ == "__main__":
    key = jax.random.PRNGKey(0)
    k1, k2 = jax.random.split(key)

    B, n_mels, T = 4, 16, 128   # batch of small mel spectrograms, T lane-dense
    mel_batch = jax.random.normal(k1, (B, n_mels, T), dtype=jnp.float32)
    raw_batch = 3.0 * jax.random.normal(k2, (B, n_mels, T), dtype=jnp.float32) - 5.0

    # ---- batched path: one pallas_call per variant for the whole batch ----
    out_mvn = jax.block_until_ready(norm_mvn(mel_batch, raw_batch))
    out_strip = jax.block_until_ready(norm_strip_mvn(mel_batch, raw_batch))
    out_minmax = jax.block_until_ready(norm_minmax(mel_batch, raw_batch))
    out_none = jax.block_until_ready(no_norm(mel_batch, raw_batch))

    # references applied per spectrogram (semantics of the 2-D PyTorch fns)
    ref_mvn = jnp.stack([_ref_mvn(mel_batch[i], raw_batch[i]) for i in range(B)])
    ref_strip = jnp.stack([_ref_strip_mvn(mel_batch[i], raw_batch[i]) for i in range(B)])
    ref_minmax = jnp.stack([_ref_minmax(mel_batch[i], raw_batch[i]) for i in range(B)])

    assert jnp.allclose(out_mvn, ref_mvn, atol=1e-5, rtol=1e-5)
    assert jnp.allclose(out_strip, ref_strip, atol=1e-5, rtol=1e-5)
    assert jnp.allclose(out_minmax, ref_minmax, atol=1e-5, rtol=1e-5)
    assert out_none is mel_batch                         # true identity

    # ---- single-spectrogram path via DeNormalizer (matches PyTorch usage) ----
    mel2d, raw2d = mel_batch[0], raw_batch[0]
    denorm_mvn = DeNormalizer(functools.partial(norm_mvn, non_normed_mel_spec=raw2d))
    denorm_strip = DeNormalizer(functools.partial(norm_strip_mvn, non_normed_mel_spec=raw2d))
    denorm_minmax = DeNormalizer(functools.partial(norm_minmax, non_normed_mel_spec=raw2d))
    denorm_none = DeNormalizer(no_norm)

    o1 = jax.block_until_ready(denorm_mvn(mel2d))
    o2 = jax.block_until_ready(denorm_strip(mel2d))
    o3 = jax.block_until_ready(denorm_minmax(mel2d))
    o4 = denorm_none(mel2d)

    assert jnp.allclose(o1, _ref_mvn(mel2d, raw2d), atol=1e-5, rtol=1e-5)
    assert jnp.allclose(o2, _ref_strip_mvn(mel2d, raw2d), atol=1e-5, rtol=1e-5)
    assert jnp.allclose(o3, _ref_minmax(mel2d, raw2d), atol=1e-5, rtol=1e-5)
    assert o4 is mel2d

    print("KERNEL_OK")
</pallas_src>

<mosaic_0001>
module attributes {stable_mosaic.version = 11 : i64} {
  func.func @_mvn_kernel(%arg0: i32, %arg1: memref<1x16x128xf32, #tpu.memory_space<vmem>>, %arg2: memref<1x16x128xf32, #tpu.memory_space<vmem>>, %arg3: memref<1x16x128xf32, #tpu.memory_space<vmem>>) attributes {dimension_semantics = [#tpu.dimension_semantics<parallel>], iteration_bounds = array<i64: 4>, scalar_prefetch = 0 : i64, scratch_operands = 0 : i64, tpu.core_type = #tpu.core_type<tc>, window_params = [{transform_indices = @transform_0, window_bounds = array<i64: 1, 16, 128>}, {transform_indices = @transform_1, window_bounds = array<i64: 1, 16, 128>}, {transform_indices = @transform_2, window_bounds = array<i64: 1, 16, 128>}]} {
    %c0 = arith.constant 0 : index
    %c0_0 = arith.constant 0 : index
    %c0_1 = arith.constant 0 : index
    %0 = vector.load %arg2[%c0, %c0_0, %c0_1] : memref<1x16x128xf32, #tpu.memory_space<vmem>>, vector<1x16x128xf32>
    %1 = vector.shape_cast %0 : vector<1x16x128xf32> to vector<1x1x16x128xf32>
    %cst = arith.constant dense<0.000000e+00> : vector<1xf32>
    %2 = vector.multi_reduction <add>, %1, %cst [1, 2, 3] : vector<1x1x16x128xf32> to vector<1xf32>
    %3 = vector.shape_cast %2 : vector<1xf32> to vector<1x1x1x1xf32>
    %4 = vector.extract %3[0, 0, 0, 0] : f32 from vector<1x1x1x1xf32>
    %5 = arith.mulf %0, %0 : vector<1x16x128xf32>
    %6 = vector.shape_cast %5 : vector<1x16x128xf32> to vector<1x1x16x128xf32>
    %cst_2 = arith.constant dense<0.000000e+00> : vector<1xf32>
    %7 = vector.multi_reduction <add>, %6, %cst_2 [1, 2, 3] : vector<1x1x16x128xf32> to vector<1xf32>
    %8 = vector.shape_cast %7 : vector<1xf32> to vector<1x1x1x1xf32>
    %9 = vector.extract %8[0, 0, 0, 0] : f32 from vector<1x1x1x1xf32>
    %cst_3 = arith.constant 4.8828125E-4 : f32
    %10 = arith.mulf %4, %cst_3 : f32
    %cst_4 = arith.constant 4.8828125E-4 : f32
    %11 = arith.mulf %9, %cst_4 : f32
    %12 = arith.mulf %10, %10 : f32
    %13 = arith.subf %11, %12 : f32
    %cst_5 = arith.constant 0.000000e+00 : f32
    %14 = arith.maximumf %13, %cst_5 : f32
    %15 = math.sqrt %14 : f32
    %c0_6 = arith.constant 0 : index
    %c0_7 = arith.constant 0 : index
    %c0_8 = arith.constant 0 : index
    %16 = vector.load %arg1[%c0_6, %c0_7, %c0_8] : memref<1x16x128xf32, #tpu.memory_space<vmem>>, vector<1x16x128xf32>
    %17 = vector.broadcast %15 : f32 to vector<1x16x128xf32>
    %18 = arith.mulf %16, %17 : vector<1x16x128xf32>
    %19 = vector.broadcast %10 : f32 to vector<1x16x128xf32>
    %20 = arith.addf %18, %19 : vector<1x16x128xf32>
    %c0_9 = arith.constant 0 : index
    %c0_10 = arith.constant 0 : index
    %c0_11 = arith.constant 0 : index
    %21 = vector.load %arg3[%c0_9, %c0_10, %c0_11] : memref<1x16x128xf32, #tpu.memory_space<vmem>>, vector<1x16x128xf32>
    tpu.vector_store %arg3[%c0_9, %c0_10, %c0_11], %20 {strides = array<i32>} : memref<1x16x128xf32, #tpu.memory_space<vmem>>, vector<1x16x128xf32>,
    return
  }
  func.func @transform_0(%arg0: i32) -> (i32, i32, i32) {
    %c0_i32 = arith.constant 0 : i32
    %c0_i32_0 = arith.constant 0 : i32
    %c0_i32_1 = arith.constant 0 : i32
    return %arg0, %c0_i32, %c0_i32_0 : i32, i32, i32
  }
  func.func @transform_1(%arg0: i32) -> (i32, i32, i32) {
    %c0_i32 = arith.constant 0 : i32
    %c0_i32_0 = arith.constant 0 : i32
    %c0_i32_1 = arith.constant 0 : i32
    return %arg0, %c0_i32, %c0_i32_0 : i32, i32, i32
  }
  func.func @transform_2(%arg0: i32) -> (i32, i32, i32) {
    %c0_i32 = arith.constant 0 : i32
    %c0_i32_0 = arith.constant 0 : i32
    %c0_i32_1 = arith.constant 0 : i32
    return %arg0, %c0_i32, %c0_i32_0 : i32, i32, i32
  }
}

</mosaic_0001>

<bundles_post_ra>
// kernel: tpu_custom_call.1
= control target key start
LH: loop header
LB: loop body
LE: loop exit
PB: predicated region body
PF: predicated region fallthrough
CT: control target
= control target key end

     0   :  { %7 = vsyncpa [#allocation3], 0  ;;  %s835_s0 = inlined_call_operand.hbm [shape: f32[4,16,128], index: 0, kind: input, shape index: {}]   ;;  %s836_s1 = inlined_call_operand.hbm [shape: f32[4,16,128], index: 1, kind: input, shape index: {}]   ;;  %s837_s2 = inlined_call_operand.hbm [shape: f32[4,16,128], index: 2, kind: output, shape index: {}]  }
   0x1   :  { %9 = vsyncpa [#allocation3 + $0x1], 0 }
   0x2   :  { %10 = vsyncpa [#allocation6], 0 }
   0x3   :  { %12 = vsyncpa [#allocation6 + $0x1], 0 }
   0x4   :  { %13 = vsyncpa [#allocation4], 0 }
   0x5   :  { %15 = vsyncpa [#allocation4 + $0x1], 0  ;;  %s600_s9 = smov 0   ;;  %s602_s10 = smov 0  }
   0x6   :  { %s604_s11 = smov 0   ;;  %s606_s12 = smov 0  }
   0x7 LB: > { %s621_s13 = sadd.s32 4294967295, %s575_s12   ;;  %s360_s14 = sadd.s32 4294967294, %s575_s12   ;;  %s575_s12 = sphi %s606_s12, %s852_s12   ;;  %s571_s11 = sphi %s604_s11, %s851_s11   ;;  %s567_s10 = sphi %s602_s10, %s850_s10   ;;  %s563_s9 = sphi %s600_s9, %s849_s9  }
   0x8   : > { %s625_s15 = sadd.s32 1, %s575_s12   ;;  %s28_s16 = sadd.s32 1, %s571_s11 }
   0x9   : > { %s25_s17 = ssub.s32 %s575_s12, %s625_s15  ;;  %p35_p0 = scmp.ne.s32.totalorder %s571_s11, %s567_s10 }
   0xa   : > { %p26_p1 = scmp.eq.s32.totalorder %s25_s17, 0  ;;  %p36_p2 = scmp.eq.s32.totalorder %s575_s12, 0 }
   0xb   : > { %p41_p3 = scmp.ne.s32.totalorder %s567_s10, %s563_s9  ;;  %p42_p4 = scmp.eq.s32.totalorder %s621_s13, 0 }
   0xc   : > { %s637_s18 = scalar_select %p26_p1, %s571_s11, %s28_s16  }
   0xd   : > { %p639_p5 = por %p36_p2, %p35_p0  ;;  %p643_p6 = por %p42_p4, %p41_p3 }
   0xe   : > { %p91_p7 = scmp.eq.s32.totalorder %s621_s13, 3  ;;  %p97_p8 = scmp.eq.s32.totalorder %s360_s14, 3 }
   0xf   : > { %s841_s20 = scalar_select %p643_p6, 1, 0 }
  0x10   : > { %p404_p9 = scmp.lt.s32.totalorder %s575_s12, 4  ;;  %p649_p10 = por %p91_p7, %p35_p0 }
  0x11   : > { %p653_p11 = por %p97_p8, %p41_p3  ;;  %s658_s23 = sand.u32 1, %s571_s11  }
  0x12   : > { %s842_s21 = scalar_select %p649_p10, 1, 0 }
  0x13   : > { %s843_s22 = scalar_select %p653_p11, 1, 0 }
  0x14   : > { %s378_s24 = sshll.u32 %s575_s12, 8  ;;  %s363_s25 = sshll.u32 %s658_s23, 4 }
  0x15   : > { %s667_s28 = scalar_lea.hbm %s835_s0, %s378_s24  ;;  %s121_s29 = scalar_lea.vmem [#allocation2], %s363_s25 }
  0x16   : > { %s128_s30 = sshll.u32 %s121_s29, 4  ;;  %p673_p12 = pnand %p404_p9, %p639_p5  ;;  %s677_s30 = int_to_ptr.vmem [resolvable:$true] %s128_s30 }
  0x17   : > { %s118_s4 = scalar_lea.sflag [#allocation3], %s658_s23  ;;  %s445_s5 = scalar_lea.hbm %s667_s28, 256 }
  0x18   : > { %p446_p13 = scmp.ne.s32.totalorder %s667_s28, %s445_s5  ;;  %p447_p0 = pneg %p673_p12 }
  0x19   : > { %s450_s8 = scalar_lea.hbm %s835_s0, 1024  ;;  %p451_p3 = scmp.lt.u32.totalorder %s667_s28, %s835_s0 }
  0x1a   : > { %p448_p1 = pnand %p447_p0, %p446_p13  ;;  %p452_p4 = scmp.lt.u32.totalorder %s450_s8, %s445_s5 }
  0x1b   : > { %p454_p7 = scmp.lt.u32.totalorder %s445_s5, %s667_s28 }
  0x1c   : > { %p449_p2 = pneg %p448_p1  ;;  %p453_p5 = por %p452_p4, %p451_p3 }
  0x1e   : > { %p455_p8 = por %p454_p7, %p453_p5 }
  0x20   : > { %p456_p9 = pnand %p455_p8, %p449_p2 }
  0x22   : > { %459 = shalt.err (!%p456_p9)
}
  0x23   : > { %s460_s17 = scalar_lea.vmem %s677_s30, 256  ;;  %s577_s19 = smov [#allocation2]  }
  0x24   : > { %p461_p13 = scmp.ne.s32.totalorder %s677_s30, %s460_s17  ;;  %s465_s26 = sshll.u32 %s577_s19, 4  ;;  %s466_s26 = int_to_ptr.vmem [resolvable:$false] %s465_s26 }
  0x25   : > { %s467_s27 = scalar_lea.vmem %s466_s26, 512  ;;  %p468_p10 = scmp.lt.s32.totalorder %s677_s30, %s466_s26 }
  0x26   : > { %p463_p1 = pnand %p461_p13, %p447_p0  ;;  %p469_p3 = scmp.lt.s32.totalorder %s467_s27, %s460_s17 }
  0x28   : > { %p464_p11 = pneg %p463_p1  ;;  %p470_p4 = por %p469_p3, %p468_p10 }
  0x2a   : > { %p471_p5 = pnand %p470_p4, %p464_p11 }
  0x2c   : > { %474 = shalt.err (!%p471_p5)
}
  0x2d   : > { %s578_s29 = smov 128   ;;  %s579_s5 = smov 8  }
  0x2e   : > { %396 = dma.hbm_to_vmem [thread:$0]  (!%p673_p12), %s667_s28, 256, %s677_s30, %s118_s4, %s578_s29, %s578_s29, %s579_s5  }
  0x2f   : > { %p369_p10 = scmp.ge.s32.totalorder %s575_s12, 1  ;;  %p157_p11 = scmp.lt.s32.totalorder %s575_s12, 5 }
  0x30   : > { %s721_s14 = scalar_lea.hbm %s836_s1, %s378_s24  ;;  %s142_s16 = scalar_lea.vmem [#allocation5], %s363_s25 }
  0x31   : > { %p712_p2 = pnand %p369_p10, %p157_p11  ;;  %s149_s17 = sshll.u32 %s142_s16, 4  ;;  %s725_s17 = int_to_ptr.vmem [resolvable:$true] %s149_s17 }
  0x32   : > { %s139_s28 = scalar_lea.sflag [#allocation6], %s658_s23  ;;  %s475_s30 = scalar_lea.hbm %s721_s14, 256 }
  0x33   : > { %p476_p7 = scmp.ne.s32.totalorder %s721_s14, %s475_s30  ;;  %s480_s24 = scalar_lea.hbm %s836_s1, 1024 }
  0x34   : > { %p481_p13 = scmp.lt.u32.totalorder %s721_s14, %s836_s1  ;;  %p482_p1 = scmp.lt.u32.totalorder %s480_s24, %s475_s30 }
  0x35   : > { %p478_p8 = pnand %p476_p7, %p447_p0  ;;  %p484_p4 = scmp.lt.u32.totalorder %s475_s30, %s721_s14 }
  0x36   : > { %p483_p3 = por %p482_p1, %p481_p13 }
  0x37   : > { %p479_p9 = pneg %p478_p8 }
  0x38   : > { %p485_p5 = por %p484_p4, %p483_p3 }
  0x3a   : > { %p486_p10 = pnand %p485_p5, %p479_p9 }
  0x3c   : > { %489 = shalt.err (!%p486_p10)
}
  0x3d   : > { %s490_s25 = scalar_lea.vmem %s725_s17, 256  ;;  %s580_s7 = smov [#allocation5]  }
  0x3e   : > { %p491_p11 = scmp.ne.s32.totalorder %s725_s17, %s490_s25  ;;  %s495_s8 = sshll.u32 %s580_s7, 4  ;;  %s496_s8 = int_to_ptr.vmem [resolvable:$false] %s495_s8 }
  0x3f   : > { %s497_s16 = scalar_lea.vmem %s496_s8, 512  ;;  %p498_p6 = scmp.lt.s32.totalorder %s725_s17, %s496_s8 }
  0x40   : > { %p493_p7 = pnand %p491_p11, %p447_p0  ;;  %p499_p13 = scmp.lt.s32.totalorder %s497_s16, %s490_s25 }
  0x42   : > { %p494_p8 = pneg %p493_p7  ;;  %p500_p1 = por %p499_p13, %p498_p6 }
  0x44   : > { %p501_p3 = pnand %p500_p1, %p494_p8 }
  0x46   : > { %504 = shalt.err (!%p501_p3)
}
  0x47   : > { %399 = dma.hbm_to_vmem [thread:$0]  (!%p673_p12), %s721_s14, 256, %s725_s17, %s139_s28, %s578_s29, %s578_s29, %s579_s5  }
  0x48   : > { %161 = sbr.rel (%p712_p2) target bundleno = 384 (0x180), region = 28  ;;  %s759_s30 = sand.u32 (!%p712_p2), 1, %s567_s10  }
  0x49   : > { %s762_s4 = sshll.u32 (!%p712_p2), %s759_s30, 4  ;;  %s164_s3 = scalar_lea.sflag (!%p712_p2), [#allocation3], %s759_s30 }
  0x4a   : > { %s167_s19 = scalar_lea.vmem (!%p712_p2), [#allocation2], %s762_s4  ;;  %p846_p6 = scmp.ne.s32.totalorder (!%p712_p2), %s841_s20, 0 }
  0x4f   : > { %550 = dma.done.wait (%p846_p6), %s164_s3, 256  }
  0x50   : > { %552 = vsyncadd (%p846_p6), %s164_s3, 4294967040  ;;  %s173_s23 = scalar_lea.sflag [#allocation6], %s759_s30  ;;  %s176_s29 = scalar_lea.vmem [#allocation5], %s762_s4 }
  0x51   : > { %554 = dma.done.wait (%p846_p6), %s173_s23, 256  }
  0x52   : > { %556 = vsyncadd (%p846_p6), %s173_s23, 4294967040  ;;  %v202_v0 = vld [vmem:[%s176_s29] sm:$0xff]  ;;  %v203_v1 = vld [vmem:[%s176_s29 + $0x8] sm:$0xff]  ;;  %s581_s24 = smov 0.0   ;;  %s201_s27 = scalar_lea.vmem [#allocation7], %s762_s4 }
  0x53   : > { %v204_v2 = vadd.f32 %v203_v1, %v202_v0  ;;  %v214_v3 = vmul.f32 %v202_v0, %v202_v0  ;;  %v215_v4 = vmul.f32 %v203_v1, %v203_v1  ;;  %v240_v26 = vld [vmem:[%s167_s19] sm:$0xff]  ;;  %v241_v27 = vld [vmem:[%s167_s19 + $0x8] sm:$0xff]  ;;  %s264_s25 = sshll.u32 %s201_s27, 4  ;;  %s380_s8 = sshll.u32 %s621_s13, 8  ;;  %s786_s25 = int_to_ptr.vmem [resolvable:$true] %s264_s25 }
  0x54   : > { %s792_s23 = scalar_lea.hbm %s837_s2, %s380_s8  ;;  %s251_s4 = scalar_lea.sflag [#allocation4], %s759_s30 }
  0x55   : > { %205 = vadd.xlane.f32.xlu0 %v204_v2  ;;  %v216_v5 = vadd.f32 %v215_v4, %v214_v3  ;;  %s505_s13 = scalar_lea.vmem %s786_s25, 256  ;;  %p847_p0 = scmp.ne.s32.totalorder %s842_s21, 0 }
  0x56   : > { %p506_p12 = scmp.ne.s32.totalorder %s786_s25, %s505_s13  ;;  %s582_s19 = smov [#allocation7]  }
  0x57   : > { %s509_s29 = sshll.u32 %s582_s19, 4  ;;  %s510_s29 = int_to_ptr.vmem [resolvable:$false] %s509_s29 }
  0x58   : > { %p507_p2 = pnand %p506_p12, %p847_p0  ;;  %p512_p4 = scmp.lt.s32.totalorder %s786_s25, %s510_s29 }
  0x59   : > { %217 = vadd.xlane.f32.xlu0 %v216_v5 }
  0x5a   : > { %p508_p9 = pneg %p507_p2 }
  0xe2   : > { %v206_v6 = vpop.xlane.xlu0 %205 }
  0xe3   : > { %v207_v7 = vrot.slane %v206_v6, 4 }
  0xe5   : > { %v208_v8 = vadd.f32 %v207_v7, %v206_v6 }
  0xe6   : > { %v218_v9 = vpop.xlane.xlu0 %217 }
  0xe7   : > { %v209_v10 = vrot.slane %v208_v8, 2  ;;  %v219_v11 = vrot.slane %v218_v9, 4 }
  0xe9   : > { %v220_v12 = vadd.f32 %v219_v11, %v218_v9  ;;  %v210_v13 = vadd.f32 %v209_v10, %v208_v8 }
  0xeb   : > { %v221_v14 = vrot.slane %v220_v12, 2  ;;  %v211_v15 = vrot.slane %v210_v13, 1 }
  0xed   : > { %v222_v16 = vadd.f32 %v221_v14, %v220_v12  ;;  %v212_v17 = vadd.f32 %v211_v15, %v210_v13 }
  0xef   : > { %381 = vpush %v212_v17  ;;  %v223_v18 = vrot.slane %v222_v16, 1 }
  0xf1   : > { %v224_v19 = vadd.f32 %v223_v18, %v222_v16 }
  0xf3   : > { %383 = vpush %v224_v19 }
 0x120   : > { %s382_s20 = spop %381 }
 0x121   : > { %s776_s5 = smul.f32 0.00048828125, %s382_s20  ;;  %s511_s20 = scalar_lea.vmem %s510_s29, 512 }
 0x122   : > { %p513_p5 = scmp.lt.s32.totalorder %s511_s20, %s505_s13 }
 0x123   : > { %s228_s6 = smul.f32 %s776_s5, %s776_s5  ;;  %v245_v31 = vstv %s776_s5 }
 0x124   : > { %s384_s14 = spop %383  ;;  %p514_p10 = por %p513_p5, %p512_p4 }
 0x125   : > { %s227_s17 = smul.f32 0.00048828125, %s384_s14 }
 0x126   : > { %p515_p11 = pnand %p514_p10, %p508_p9 }
 0x127   : > { %s229_s28 = ssub.f32 %s227_s17, %s228_s6 }
 0x129   : > { %s230_s26 = smax.f32 %s581_s24, %s229_s28 }
 0x12a   : > { %v231_v20 = vstv %s230_s26 }
 0x12b   : > { %443 = vrsqrt.f32 %v231_v20  ;;  %vm234_vm0 = vcmp.eq.f32.partialorder %v231_v20, inf  ;;  %v237_v23 = vand.u32 2147483648, %v231_v20  ;;  %vm236_vm1 = vcmp.eq.f32.partialorder %v231_v20, 0.0 }
 0x135   : > { %v444_v21 = vpop.eup %443 }
 0x136   : > { %v233_v22 = vmul.f32 %v444_v21, %v231_v20 }
 0x138   : > { %v235_v24 = vsel %vm234_vm0, %v231_v20, %v233_v22 }
 0x139   : > { %v238_v25 = vsel %vm236_vm1, %v237_v23, %v235_v24 }
 0x13a   : > { %385 = vpush %v238_v25 }
 0x16b   : > { %s386_s7 = spop %385 }
 0x16c   : > { %v242_v28 = vstv %s386_s7 }
 0x16d   : > { %v243_v29 = vmul.f32 %v242_v28, %v240_v26  ;;  %v244_v30 = vmul.f32 %v242_v28, %v241_v27 }
 0x16f   : > { %v246_v32 = vadd.f32 %v245_v31, %v243_v29  ;;  %v247_v33 = vadd.f32 %v245_v31, %v244_v30 }
 0x171   : > { %248 = vst [vmem:[%s201_s27] sm:$0xff] %v246_v32  ;;  %249 = vst [vmem:[%s201_s27 + $0x8] sm:$0xff] %v247_v33 }
 0x172   : > { %518 = shalt.err (!%p515_p11)
}
 0x173   : > { %s519_s5 = scalar_lea.hbm %s792_s23, 256  ;;  %s523_s17 = scalar_lea.hbm %s837_s2, 1024 }
 0x174   : > { %p520_p7 = scmp.ne.s32.totalorder %s792_s23, %s519_s5  ;;  %p524_p1 = scmp.lt.u32.totalorder %s792_s23, %s837_s2 }
 0x175   : > { %p525_p3 = scmp.lt.u32.totalorder %s523_s17, %s519_s5  ;;  %p527_p12 = scmp.lt.u32.totalorder %s519_s5, %s792_s23 }
 0x176   : > { %p521_p8 = pnand %p520_p7, %p847_p0 }
 0x177   : > { %p526_p6 = por %p525_p3, %p524_p1 }
 0x178   : > { %p522_p13 = pneg %p521_p8 }
 0x179   : > { %p528_p2 = por %p527_p12, %p526_p6 }
 0x17b   : > { %p529_p9 = pnand %p528_p2, %p522_p13 }
 0x17d   : > { %532 = shalt.err (!%p529_p9)
}
 0x17e   : > { %s583_s26 = smov 128   ;;  %s584_s27 = smov 8  }
 0x17f   : > { %391 = dma.vmem_to_hbm [thread:$0]  (%p847_p0), %s786_s25, 256, %s792_s23, %s251_s4, %s583_s26, %s583_s26, %s584_s27  }
 0x180 PF: > { %p405_p4 = scmp.ge.s32.totalorder %s575_s12, 2  ;;  %s279_s7 = sand.u32 1, %s563_s9  }
 0x181   : > { %p848_p5 = scmp.ne.s32.totalorder %s843_s22, 0  ;;  %s280_s8 = scalar_lea.sflag [#allocation4], %s279_s7 }
 0x183   : > { %p401_p10 = pnand %p405_p4, %p848_p5 }
 0x185   : > { %558 = dma.done.wait (!%p401_p10), %s280_s8, 256  }
 0x186   : > { %560 = vsyncadd (!%p401_p10), %s280_s8, 4294967040  ;;  %p18_p11 = scmp.ge.s32.totalorder %s625_s15, 6   ;;  %s849_s9 = smov %s567_s10 }
 0x187   : > { %s850_s10 = smov %s571_s11  ;;  %s851_s11 = smov %s637_s18 }
 0x188   : > { %s852_s12 = smov %s625_s15  ;;  %20 = sbr.rel (!%p18_p11) target bundleno = 7 (0x7), region = 86 }
 0x18f   :  { %285 = vsyncpa [#allocation3], 1 }
 0x190   :  { %287 = vsyncpa [#allocation3 + $0x1], 1 }
 0x191   :  { %288 = vsyncpa [#allocation6], 1 }
 0x192   :  { %290 = vsyncpa [#allocation6 + $0x1], 1 }
 0x193   :  { %291 = vsyncpa [#allocation4], 1 }
 0x194   :  { %293 = vsyncpa [#allocation4 + $0x1], 1 }

</bundles_post_ra>
